<compile_context>
chip_gen: v6e
topology: v6e:2x2x1
jax: 0.10.0
libtpu: 0.0.40
codegen_flags: <defaults>
</compile_context>

<pallas_src>
import functools
import math

import jax
import jax.numpy as jnp
from jax import lax
from jax.experimental import pallas as pl
from jax.experimental.pallas import tpu as pltpu


def _round_up(v, m):
    return (v + m - 1) // m * m


# ---------------------------------------------------------------------------
# Pass 1: dinv[i] = rowsum(A)[i] ** -0.5, streamed over the bf16 copy of A.
# ---------------------------------------------------------------------------
def degree_kernel(a_ref, dinv_ref):
    k = pl.program_id(1)

    @pl.when(k == 0)
    def _init():
        dinv_ref[...] = jnp.zeros_like(dinv_ref)

    # Cast the low-precision tile to f32 BEFORE the reduction so the rowsum
    # accumulates in f32 (bf16 accumulation would corrupt D^-0.5 for
    # high-degree nodes).
    dinv_ref[...] += jnp.sum(a_ref[...].astype(jnp.float32), axis=-1,
                             keepdims=True)

    @pl.when(k == pl.num_programs(1) - 1)
    def _finalize():
        d = dinv_ref[...]
        # d == 0 happens for zero-padded rows (or genuinely isolated nodes).
        # The torch reference would emit inf/NaN rows for isolated nodes; here
        # they get dinv = 0 -> output row == bias (documented divergence).
        dinv_ref[...] = jnp.where(d > 0.0, lax.rsqrt(d), 0.0)


# ---------------------------------------------------------------------------
# Pass 2: out = Dinv * (A @ z) [@ W] + b
#   z = Dinv * x            (apply_w=True,  Dout >= Din, W fused in epilogue)
#   z = (Dinv * x) @ W^T    (apply_w=False, Dout <  Din, projection-first)
#   z = Dinv * x, no W/bias (apply_w=False, large-W fallback, XLA projects)
# ---------------------------------------------------------------------------
def gnn_matmul_kernel(dinv_ref, z_ref, a_ref, w_ref, b_ref, o_ref, acc_ref,
                      *, apply_w):
    k = pl.program_id(1)

    @pl.when(k == 0)
    def _init():
        acc_ref[...] = jnp.zeros_like(acc_ref)

    # bf16 x bf16 -> f32 accumulate on the MXU.
    acc_ref[...] += jnp.dot(a_ref[...], z_ref[...],
                            preferred_element_type=jnp.float32)

    @pl.when(k == pl.num_programs(1) - 1)
    def _finalize():
        h = dinv_ref[...] * acc_ref[...]              # row-side D^-1/2, f32
        if apply_w:                                   # static (trace-time)
            h = jnp.dot(h.astype(w_ref.dtype), w_ref[...],
                        preferred_element_type=jnp.float32)
        o_ref[...] = (h + b_ref[...]).astype(o_ref.dtype)


# ---------------------------------------------------------------------------
# Wrapper
# ---------------------------------------------------------------------------
def gnn_layer(x, A, W, b, *, tm=256, tk=512, compute_dtype=jnp.bfloat16,
              out_dtype=jnp.float32):
    """x: (N, Din), A: (N, N), W: (Dout, Din) torch layout, b: (Dout,)."""
    N, Din = x.shape
    Dout, Din_w = W.shape
    assert Din_w == Din and A.shape == (N, N) and b.shape == (Dout,)

    x = x.astype(jnp.float32)
    W32 = W.astype(jnp.float32)
    b32 = b.astype(jnp.float32)

    # ---- Tile sizes ----
    # Cap tm so the "parallel" row axis keeps >=2 tiles (v7x megacore);
    # tk capped at the 128-aligned matrix width.
    tm_cap = _round_up(max(-(-N // 2), 8), 8)
    tm = max(8, min(tm, tm_cap))
    tk = max(128, min(tk, _round_up(N, 128)))
    np_r = _round_up(N, tm)
    np_c = _round_up(N, tk)
    grid = (np_r // tm, np_c // tk)

    # ---- Single fused pad+cast of A: the only materialized copy of A. ----
    A_cd = jnp.pad(A.astype(compute_dtype), ((0, np_r - N), (0, np_c - N)))

    # ---- Pass 1: degrees (streams the bf16 copy, f32 accumulation). ----
    dinv = pl.pallas_call(
        degree_kernel,
        out_shape=jax.ShapeDtypeStruct((np_r, 1), jnp.float32),
        grid_spec=pltpu.PrefetchScalarGridSpec(
            num_scalar_prefetch=0,
            grid=grid,
            in_specs=[pl.BlockSpec((tm, tk), lambda i, k: (i, k))],
            out_specs=pl.BlockSpec((tm, 1), lambda i, k: (i, 0)),
        ),
        compiler_params=pltpu.CompilerParams(
            dimension_semantics=("parallel", "arbitrary"),
            vmem_limit_bytes=32 * 1024 * 1024),
    )(A_cd)

    dinv_n = dinv[:N]                       # (N, 1) f32
    x_scaled = dinv_n * x                   # fold column-side D^-1/2 into x

    # ---- Matmul-order / W-placement choice (static, shape-driven). ----
    dp = _round_up(Dout, 128)               # lane-dense output width
    project_first = Dout < Din
    inner = Dout if project_first else Din
    kp = _round_up(inner, 128)              # z / accumulator width

    apply_w = False
    if project_first:
        z_real = x_scaled @ W32.T                       # (N, Dout)
        out_w = dp                                      # == kp
        w_pad = jnp.zeros((8, 128), compute_dtype)      # unused dummy operand
        b_row = b32
    else:
        z_real = x_scaled                               # (N, Din)
        if kp * dp * 2 <= 8 * 1024 * 1024:              # W fits comfortably
            apply_w = True
            out_w = dp
            w_pad = jnp.pad(W32.T, ((0, kp - Din), (0, dp - Dout))
                            ).astype(compute_dtype)
            b_row = b32
        else:
            # Large W: keep the kernel pure aggregation; project with XLA.
            out_w = kp
            w_pad = jnp.zeros((8, 128), compute_dtype)
            b_row = jnp.zeros((inner,), jnp.float32)

    z_pad = jnp.pad(z_real, ((0, np_c - N), (0, kp - z_real.shape[1]))
                    ).astype(compute_dtype)
    b_pad = jnp.pad(b_row, (0, out_w - b_row.shape[0])).reshape(1, out_w)

    # ---- VMEM budget derived from the working set (safe on v5e/v6e/v7x). ----
    est = (2 * tm * tk * 2              # double-buffered A tiles
           + 2 * tk * kp * 2            # double-buffered z tiles
           + 2 * tm * out_w * 4         # double-buffered output tiles
           + tm * kp * 4                # f32 accumulator scratch
           + (kp * dp * 2 if apply_w else 8 * 128 * 2)   # resident W
           + 2 * tm * 4 + 2 * out_w * 4)                 # dinv + bias
    vmem_limit = int(min(96 * 2 ** 20, max(32 * 2 ** 20, 2 * est)))

    kernel = functools.partial(gnn_matmul_kernel, apply_w=apply_w)
    out_pad = pl.pallas_call(
        kernel,
        out_shape=jax.ShapeDtypeStruct((np_r, out_w), out_dtype),
        grid_spec=pltpu.PrefetchScalarGridSpec(
            num_scalar_prefetch=0,
            grid=grid,
            in_specs=[
                pl.BlockSpec((tm, 1), lambda i, k: (i, 0)),        # D^-1/2
                pl.BlockSpec((tk, kp), lambda i, k: (k, 0)),       # z
                pl.BlockSpec((tm, tk), lambda i, k: (i, k)),       # A tile
                pl.BlockSpec(w_pad.shape, lambda i, k: (0, 0)),    # W / dummy
                pl.BlockSpec((1, out_w), lambda i, k: (0, 0)),     # bias
            ],
            out_specs=pl.BlockSpec((tm, out_w), lambda i, k: (i, 0)),
            scratch_shapes=[pltpu.VMEM((tm, kp), jnp.float32)],    # f32 acc
        ),
        compiler_params=pltpu.CompilerParams(
            dimension_semantics=("parallel", "arbitrary"),
            vmem_limit_bytes=vmem_limit),
    )(dinv, z_pad, A_cd, w_pad, b_pad)

    if apply_w or project_first:
        return out_pad[:N, :Dout].astype(out_dtype)
    # Large-W fallback: projection + bias hoisted to a tiled XLA GEMM.
    h = out_pad[:N, :Din].astype(jnp.float32)
    return (h @ W32.T + b32).astype(out_dtype)


# ---------------------------------------------------------------------------
# Reference (straight port of the PyTorch module in f32)
# ---------------------------------------------------------------------------
def reference_f32(x, A, W, b):
    d = jnp.sum(A, axis=-1, keepdims=True)
    dis = d ** (-0.5)
    L = dis * A * dis.T
    return (L @ x) @ W.T + b


# ---------------------------------------------------------------------------
# Demo / self-test
# ---------------------------------------------------------------------------
if __name__ == "__main__":
    key = jax.random.PRNGKey(0)
    layer = jax.jit(gnn_layer,
                    static_argnames=("tm", "tk", "compute_dtype", "out_dtype"))

    # Case 1 (Dout >= Din, W fused in epilogue), tiles divide exactly.
    # Case 2 (Dout <  Din, projection-first).
    # Case 3 (non-aligned N -> exercises row/col zero padding).
    for (N, Din, Dout) in [(256, 32, 64), (128, 64, 16), (200, 48, 100)]:
        key, k_a, k_x, k_w, k_b = jax.random.split(key, 5)

        # Strictly positive adjacency => positive degrees (matches the
        # module's implicit assumption that D^-0.5 is finite).
        A = jax.random.uniform(k_a, (N, N), jnp.float32, minval=0.1, maxval=1.0)
        x = jax.random.normal(k_x, (N, Din), jnp.float32)

        # nn.Linear-style init: U(-1/sqrt(Din), 1/sqrt(Din)).
        bound = 1.0 / math.sqrt(Din)
        W = jax.random.uniform(k_w, (Dout, Din), jnp.float32,
                               minval=-bound, maxval=bound)   # torch layout
        b = jax.random.uniform(k_b, (Dout,), jnp.float32,
                               minval=-bound, maxval=bound)

        out = jax.block_until_ready(layer(x, A, W, b))
        assert out.shape == (N, Dout)

        # Tolerance accounts for the bf16 MXU streams (f32 accumulation).
        ref32 = reference_f32(x, A, W, b)
        assert jnp.allclose(out, ref32, atol=3e-2, rtol=3e-2), \
            f"mismatch vs float32 reference for shape {(N, Din, Dout)}"

    print("KERNEL_OK")
</pallas_src>

<mosaic_0001>
module attributes {stable_mosaic.version = 11 : i64} {
  func.func @degree_kernel(%arg0: i32, %arg1: i32, %arg2: memref<128x256xbf16, #tpu.memory_space<vmem>>, %arg3: memref<128x1xf32, #tpu.memory_space<vmem>>) attributes {dimension_semantics = [#tpu.dimension_semantics<parallel>, #tpu.dimension_semantics<arbitrary>], iteration_bounds = array<i64: 2, 1>, scalar_prefetch = 0 : i64, scratch_operands = 0 : i64, tpu.core_type = #tpu.core_type<tc>, window_params = [{transform_indices = @transform_0, window_bounds = array<i64: 128, 256>}, {transform_indices = @transform_1, window_bounds = array<i64: 128, 1>}]} {
    %c0_i32 = arith.constant 0 : i32
    %0 = arith.cmpi eq, %arg1, %c0_i32 : i32
    %1 = arith.extui %0 : i1 to i32
    %c0_i32_0 = arith.constant 0 : i32
    %2 = arith.cmpi ne, %1, %c0_i32_0 : i32
    scf.if %2 {
      %cst_8 = arith.constant 0.000000e+00 : f32
      %13 = vector.broadcast %cst_8 : f32 to vector<128x1xf32>
      %c0_9 = arith.constant 0 : index
      %c0_10 = arith.constant 0 : index
      %14 = vector.load %arg3[%c0_9, %c0_10] : memref<128x1xf32, #tpu.memory_space<vmem>>, vector<128x1xf32>
      tpu.vector_store %arg3[%c0_9, %c0_10], %13 {strides = array<i32>} : memref<128x1xf32, #tpu.memory_space<vmem>>, vector<128x1xf32>,
    } else {
    }
    %c0 = arith.constant 0 : index
    %c0_1 = arith.constant 0 : index
    %3 = vector.load %arg3[%c0, %c0_1] : memref<128x1xf32, #tpu.memory_space<vmem>>, vector<128x1xf32>
    %c0_2 = arith.constant 0 : index
    %c0_3 = arith.constant 0 : index
    %4 = vector.load %arg2[%c0_2, %c0_3] : memref<128x256xbf16, #tpu.memory_space<vmem>>, vector<128x256xbf16>
    %5 = arith.extf %4 : vector<128x256xbf16> to vector<128x256xf32>
    %cst = arith.constant dense<0.000000e+00> : vector<128xf32>
    %6 = vector.multi_reduction <add>, %5, %cst [1] : vector<128x256xf32> to vector<128xf32>
    %7 = vector.shape_cast %6 : vector<128xf32> to vector<128x1xf32>
    %8 = arith.addf %3, %7 : vector<128x1xf32>
    %c0_4 = arith.constant 0 : index
    %c0_5 = arith.constant 0 : index
    %9 = vector.load %arg3[%c0_4, %c0_5] : memref<128x1xf32, #tpu.memory_space<vmem>>, vector<128x1xf32>
    tpu.vector_store %arg3[%c0_4, %c0_5], %8 {strides = array<i32>} : memref<128x1xf32, #tpu.memory_space<vmem>>, vector<128x1xf32>,
    %c0_i32_6 = arith.constant 0 : i32
    %10 = arith.cmpi eq, %arg1, %c0_i32_6 : i32
    %11 = arith.extui %10 : i1 to i32
    %c0_i32_7 = arith.constant 0 : i32
    %12 = arith.cmpi ne, %11, %c0_i32_7 : i32
    scf.if %12 {
      %c0_8 = arith.constant 0 : index
      %c0_9 = arith.constant 0 : index
      %13 = vector.load %arg3[%c0_8, %c0_9] : memref<128x1xf32, #tpu.memory_space<vmem>>, vector<128x1xf32>
      %cst_10 = arith.constant 0.000000e+00 : f32
      %14 = vector.broadcast %cst_10 : f32 to vector<128x1xf32>
      %15 = arith.cmpf ogt, %13, %14 : vector<128x1xf32>
      %16 = math.rsqrt %13 : vector<128x1xf32>
      %cst_11 = arith.constant 0.000000e+00 : f32
      %17 = vector.broadcast %cst_11 : f32 to vector<128x1xf32>
      %18 = arith.select %15, %16, %17 : vector<128x1xi1>, vector<128x1xf32>
      %c0_12 = arith.constant 0 : index
      %c0_13 = arith.constant 0 : index
      %19 = vector.load %arg3[%c0_12, %c0_13] : memref<128x1xf32, #tpu.memory_space<vmem>>, vector<128x1xf32>
      tpu.vector_store %arg3[%c0_12, %c0_13], %18 {strides = array<i32>} : memref<128x1xf32, #tpu.memory_space<vmem>>, vector<128x1xf32>,
    } else {
    }
    return
  }
  func.func @transform_0(%arg0: i32, %arg1: i32) -> (i32, i32) {
    %c0_i32 = arith.constant 0 : i32
    return %arg0, %arg1 : i32, i32
  }
  func.func @transform_1(%arg0: i32, %arg1: i32) -> (i32, i32) {
    %c0_i32 = arith.constant 0 : i32
    %c0_i32_0 = arith.constant 0 : i32
    return %arg0, %c0_i32 : i32, i32
  }
}

module attributes {stable_mosaic.version = 11 : i64} {
  func.func @gnn_matmul_kernel(%arg0: i32, %arg1: i32, %arg2: memref<128x1xf32, #tpu.memory_space<vmem>>, %arg3: memref<256x128xbf16, #tpu.memory_space<vmem>>, %arg4: memref<128x256xbf16, #tpu.memory_space<vmem>>, %arg5: memref<128x128xbf16, #tpu.memory_space<vmem>>, %arg6: memref<1x128xf32, #tpu.memory_space<vmem>>, %arg7: memref<128x128xf32, #tpu.memory_space<vmem>>, %arg8: memref<128x128xf32, #tpu.memory_space<vmem>>) attributes {dimension_semantics = [#tpu.dimension_semantics<parallel>, #tpu.dimension_semantics<arbitrary>], iteration_bounds = array<i64: 2, 1>, scalar_prefetch = 0 : i64, scratch_operands = 1 : i64, tpu.core_type = #tpu.core_type<tc>, window_params = [{transform_indices = @transform_0, window_bounds = array<i64: 128, 1>}, {transform_indices = @transform_1, window_bounds = array<i64: 256, 128>}, {transform_indices = @transform_2, window_bounds = array<i64: 128, 256>}, {pipeline_mode = #tpu.pipeline_mode<synchronous>, transform_indices = @transform_3, window_bounds = array<i64: 128, 128>}, {pipeline_mode = #tpu.pipeline_mode<synchronous>, transform_indices = @transform_4, window_bounds = array<i64: 1, 128>}, {transform_indices = @transform_5, window_bounds = array<i64: 128, 128>}]} {
    %c0_i32 = arith.constant 0 : i32
    %0 = arith.cmpi eq, %arg1, %c0_i32 : i32
    %1 = arith.extui %0 : i1 to i32
    %c0_i32_0 = arith.constant 0 : i32
    %2 = arith.cmpi ne, %1, %c0_i32_0 : i32
    scf.if %2 {
      %cst_10 = arith.constant 0.000000e+00 : f32
      %12 = vector.broadcast %cst_10 : f32 to vector<128x128xf32>
      %c0_11 = arith.constant 0 : index
      %c0_12 = arith.constant 0 : index
      %13 = vector.load %arg8[%c0_11, %c0_12] : memref<128x128xf32, #tpu.memory_space<vmem>>, vector<128x128xf32>
      tpu.vector_store %arg8[%c0_11, %c0_12], %12 {strides = array<i32>} : memref<128x128xf32, #tpu.memory_space<vmem>>, vector<128x128xf32>,
    } else {
    }
    %c0 = arith.constant 0 : index
    %c0_1 = arith.constant 0 : index
    %3 = vector.load %arg8[%c0, %c0_1] : memref<128x128xf32, #tpu.memory_space<vmem>>, vector<128x128xf32>
    %c0_2 = arith.constant 0 : index
    %c0_3 = arith.constant 0 : index
    %4 = vector.load %arg4[%c0_2, %c0_3] : memref<128x256xbf16, #tpu.memory_space<vmem>>, vector<128x256xbf16>
    %c0_4 = arith.constant 0 : index
    %c0_5 = arith.constant 0 : index
    %5 = vector.load %arg3[%c0_4, %c0_5] : memref<256x128xbf16, #tpu.memory_space<vmem>>, vector<256x128xbf16>
    %cst = arith.constant dense<0.000000e+00> : vector<128x128xf32>
    %6 = tpu.matmul %4, %5, %cst {dimension_numbers = #tpu.dot_dimension_numbers<[1], [0], [0], [1], [0, 0, 1, 1], [], []>} : vector<128x256xbf16>, vector<256x128xbf16>, vector<128x128xf32> -> vector<128x128xf32>
    %7 = arith.addf %3, %6 : vector<128x128xf32>
    %c0_6 = arith.constant 0 : index
    %c0_7 = arith.constant 0 : index
    %8 = vector.load %arg8[%c0_6, %c0_7] : memref<128x128xf32, #tpu.memory_space<vmem>>, vector<128x128xf32>
    tpu.vector_store %arg8[%c0_6, %c0_7], %7 {strides = array<i32>} : memref<128x128xf32, #tpu.memory_space<vmem>>, vector<128x128xf32>,
    %c0_i32_8 = arith.constant 0 : i32
    %9 = arith.cmpi eq, %arg1, %c0_i32_8 : i32
    %10 = arith.extui %9 : i1 to i32
    %c0_i32_9 = arith.constant 0 : i32
    %11 = arith.cmpi ne, %10, %c0_i32_9 : i32
    scf.if %11 {
      %c0_10 = arith.constant 0 : index
      %c0_11 = arith.constant 0 : index
      %12 = vector.load %arg2[%c0_10, %c0_11] : memref<128x1xf32, #tpu.memory_space<vmem>>, vector<128x1xf32>
      %c0_12 = arith.constant 0 : index
      %c0_13 = arith.constant 0 : index
      %13 = vector.load %arg8[%c0_12, %c0_13] : memref<128x128xf32, #tpu.memory_space<vmem>>, vector<128x128xf32>
      %14 = vector.broadcast %12 : vector<128x1xf32> to vector<128x128xf32>
      %15 = arith.mulf %14, %13 : vector<128x128xf32>
      %16 = arith.truncf %15 : vector<128x128xf32> to vector<128x128xbf16>
      %c0_14 = arith.constant 0 : index
      %c0_15 = arith.constant 0 : index
      %17 = vector.load %arg5[%c0_14, %c0_15] : memref<128x128xbf16, #tpu.memory_space<vmem>>, vector<128x128xbf16>
      %cst_16 = arith.constant dense<0.000000e+00> : vector<128x128xf32>
      %18 = tpu.matmul %16, %17, %cst_16 {dimension_numbers = #tpu.dot_dimension_numbers<[1], [0], [0], [1], [0, 0, 1, 1], [], []>} : vector<128x128xbf16>, vector<128x128xbf16>, vector<128x128xf32> -> vector<128x128xf32>
      %c0_17 = arith.constant 0 : index
      %c0_18 = arith.constant 0 : index
      %19 = vector.load %arg6[%c0_17, %c0_18] : memref<1x128xf32, #tpu.memory_space<vmem>>, vector<1x128xf32>
      %20 = vector.broadcast %19 : vector<1x128xf32> to vector<128x128xf32>
      %21 = arith.addf %18, %20 : vector<128x128xf32>
      %c0_19 = arith.constant 0 : index
      %c0_20 = arith.constant 0 : index
      %22 = vector.load %arg7[%c0_19, %c0_20] : memref<128x128xf32, #tpu.memory_space<vmem>>, vector<128x128xf32>
      tpu.vector_store %arg7[%c0_19, %c0_20], %21 {strides = array<i32>} : memref<128x128xf32, #tpu.memory_space<vmem>>, vector<128x128xf32>,
    } else {
    }
    return
  }
  func.func @transform_0(%arg0: i32, %arg1: i32) -> (i32, i32) {
    %c0_i32 = arith.constant 0 : i32
    %c0_i32_0 = arith.constant 0 : i32
    return %arg0, %c0_i32 : i32, i32
  }
  func.func @transform_1(%arg0: i32, %arg1: i32) -> (i32, i32) {
    %c0_i32 = arith.constant 0 : i32
    %c0_i32_0 = arith.constant 0 : i32
    return %arg1, %c0_i32 : i32, i32
  }
  func.func @transform_2(%arg0: i32, %arg1: i32) -> (i32, i32) {
    %c0_i32 = arith.constant 0 : i32
    return %arg0, %arg1 : i32, i32
  }
  func.func @transform_3(%arg0: i32, %arg1: i32) -> (i32, i32) {
    %c0_i32 = arith.constant 0 : i32
    %c0_i32_0 = arith.constant 0 : i32
    %c0_i32_1 = arith.constant 0 : i32
    return %c0_i32, %c0_i32_0 : i32, i32
  }
  func.func @transform_4(%arg0: i32, %arg1: i32) -> (i32, i32) {
    %c0_i32 = arith.constant 0 : i32
    %c0_i32_0 = arith.constant 0 : i32
    %c0_i32_1 = arith.constant 0 : i32
    return %c0_i32, %c0_i32_0 : i32, i32
  }
  func.func @transform_5(%arg0: i32, %arg1: i32) -> (i32, i32) {
    %c0_i32 = arith.constant 0 : i32
    %c0_i32_0 = arith.constant 0 : i32
    return %arg0, %c0_i32 : i32, i32
  }
}

</mosaic_0001>

<bundles_post_ra>
// kernel: gnn_layer.2
= control target key start
LH: loop header
LB: loop body
LE: loop exit
PB: predicated region body
PF: predicated region fallthrough
CT: control target
= control target key end

     0   :  { %s576_s6 = smov 0   ;;  %s578_s7 = smov 0   ;;  %s765_s0 = inlined_call_operand.vmem [shape: bf16[256,256], index: 0, kind: input, shape index: {}]   ;;  %s766_s1 = inlined_call_operand.vmem [shape: f32[256,1], index: 1, kind: output, shape index: {}]  }
   0x1   :  { %s580_s8 = smov 0  }
   0x2 LB: > { %s23_s9 = sadd.s32 1, %s559_s7  ;;  %p475_p0 = scmp.ge.s32.totalorder %s563_s8, 1  ;;  %s563_s8 = sphi %s580_s8, %s11_s8   ;;  %s559_s7 = sphi %s578_s7, %s768_s7   ;;  %s555_s6 = sphi %s576_s6, %s767_s6  }
   0x3   : > { %p25_p1 = scmp.ge.s32.totalorder %s23_s9, 2  ;;  %p108_p2 = scmp.lt.s32.totalorder %s563_s8, 3 }
   0x5   : > { %s770_s9 = smov (%p25_p1, %s23_s9), 0  ;;  %p109_p3 = pnand %p475_p0, %p108_p2 }
   0x6   : > { %s476_s10 = sshll.u32 (!%p109_p3), %s555_s6, 4 }
   0x7   : > { %112 = sbr.rel (%p109_p3) target bundleno = 213 (0xd5), region = 24  ;;  %p135_p4 = scmp.lt.s32.totalorder (!%p109_p3), %s476_s10, 31 }
   0xc   : > { %s772_s10 = smov (!%p135_p4, %s476_s10), 31  ;;  %vm155_vm0 = vcmask 7168   ;;  %v565_v3 = vmov 0.0  }
   0xd   : > { %s483_s11 = sshll.u32 %s772_s10, 3 }
   0xe   : > { %s597_s14 = scalar_lea.vmem %s765_s0, %s483_s11  ;;  %s602_s17 = scalar_lea.vmem %s766_s1, %s483_s11 }
   0xf   : > { %v190_v0 = vld [vmem:[%s597_s14 + $0x10] sm:$0xff]  ;;  %v188_v1 = vld [vmem:[%s597_s14] sm:$0xff]  ;;  %v191_v2 = vld [vmem:[%s597_s14 + $0x18] sm:$0xff]  ;;  %158 = vst.msk [vmem:[%s602_s17 + $0x10] sm:$0xff] %vm155_vm0, %v565_v3 }
  0x10   : > { %156 = vst.msk [vmem:[%s602_s17] sm:$0xff] %vm155_vm0, %v565_v3  ;;  %157 = vst.msk [vmem:[%s602_s17 + $0x8] sm:$0xff] %vm155_vm0, %v565_v3  ;;  %v208_v4 = vunpack.c.l.bf16 %v190_v0  ;;  %v209_v5 = vunpack.c.h.bf16 %v190_v0  ;;  %v204_v6 = vunpack.c.l.bf16 %v188_v1  ;;  %v205_v7 = vunpack.c.h.bf16 %v188_v1  ;;  %v189_v8 = vld [vmem:[%s597_s14 + $0x8] sm:$0xff]  ;;  %v192_v14 = vld [vmem:[%s597_s14 + $0x20] sm:$0xff] }
  0x11   : > { %159 = vst.msk [vmem:[%s602_s17 + $0x18] sm:$0xff] %vm155_vm0, %v565_v3  ;;  %160 = vst.msk [vmem:[%s602_s17 + $0x20] sm:$0xff] %vm155_vm0, %v565_v3  ;;  %v193_v9 = vld [vmem:[%s597_s14 + $0x28] sm:$0xff]  ;;  %v210_v10 = vunpack.c.l.bf16 %v191_v2  ;;  %v211_v11 = vunpack.c.h.bf16 %v191_v2  ;;  %v206_v12 = vunpack.c.l.bf16 %v189_v8  ;;  %v207_v13 = vunpack.c.h.bf16 %v189_v8  ;;  %v195_v23 = vld [vmem:[%s597_s14 + $0x38] sm:$0xff] }
  0x12   : > { %161 = vst.msk [vmem:[%s602_s17 + $0x28] sm:$0xff] %vm155_vm0, %v565_v3  ;;  %162 = vst.msk [vmem:[%s602_s17 + $0x30] sm:$0xff] %vm155_vm0, %v565_v3  ;;  %v242_v15 = vadd.f32 %v209_v5, %v208_v4  ;;  %v236_v16 = vadd.f32 %v205_v7, %v204_v6  ;;  %v214_v17 = vunpack.c.l.bf16 %v193_v9  ;;  %v215_v18 = vunpack.c.h.bf16 %v193_v9  ;;  %v194_v24 = vld [vmem:[%s597_s14 + $0x30] sm:$0xff]  ;;  %v197_v31 = vld [vmem:[%s597_s14 + $0x48] sm:$0xff] }
  0x13   : > { %163 = vst.msk [vmem:[%s602_s17 + $0x38] sm:$0xff] %vm155_vm0, %v565_v3  ;;  %164 = vst.msk [vmem:[%s602_s17 + $0x40] sm:$0xff] %vm155_vm0, %v565_v3  ;;  %v245_v19 = vadd.f32 %v211_v11, %v210_v10  ;;  %v239_v20 = vadd.f32 %v207_v13, %v206_v12  ;;  %v212_v21 = vunpack.c.l.bf16 %v192_v14  ;;  %v213_v22 = vunpack.c.h.bf16 %v192_v14  ;;  %v196_v32 = vld [vmem:[%s597_s14 + $0x40] sm:$0xff]  ;;  %v199_v39 = vld [vmem:[%s597_s14 + $0x58] sm:$0xff] }
  0x14   : > { %165 = vst.msk [vmem:[%s602_s17 + $0x48] sm:$0xff] %vm155_vm0, %v565_v3  ;;  %166 = vst.msk [vmem:[%s602_s17 + $0x50] sm:$0xff] %vm155_vm0, %v565_v3  ;;  %243 = vadd.xlane.f32.xlu1 %v242_v15  ;;  %237 = vadd.xlane.f32.xlu0 %v236_v16  ;;  %v251_v25 = vadd.f32 %v215_v18, %v214_v17  ;;  %v218_v26 = vunpack.c.l.bf16 %v195_v23  ;;  %v219_v28 = vunpack.c.h.bf16 %v195_v23  ;;  %v216_v29 = vunpack.c.l.bf16 %v194_v24  ;;  %v198_v40 = vld [vmem:[%s597_s14 + $0x50] sm:$0xff]  ;;  %v201_v47 = vld [vmem:[%s597_s14 + $0x68] sm:$0xff] }
  0x15   : > { %167 = vst.msk [vmem:[%s602_s17 + $0x58] sm:$0xff] %vm155_vm0, %v565_v3  ;;  %168 = vst.msk [vmem:[%s602_s17 + $0x60] sm:$0xff] %vm155_vm0, %v565_v3  ;;  %v248_v27 = vadd.f32 %v213_v22, %v212_v21  ;;  %v217_v30 = vunpack.c.h.bf16 %v194_v24  ;;  %v222_v33 = vunpack.c.l.bf16 %v197_v31  ;;  %v223_v34 = vunpack.c.h.bf16 %v197_v31  ;;  %v200_v48 = vld [vmem:[%s597_s14 + $0x60] sm:$0xff]  ;;  %v203_v55 = vld [vmem:[%s597_s14 + $0x78] sm:$0xff] }
  0x16   : > { %169 = vst.msk [vmem:[%s602_s17 + $0x68] sm:$0xff] %vm155_vm0, %v565_v3  ;;  %170 = vst.msk [vmem:[%s602_s17 + $0x70] sm:$0xff] %vm155_vm0, %v565_v3  ;;  %v257_v35 = vadd.f32 %v219_v28, %v218_v26  ;;  %v220_v37 = vunpack.c.l.bf16 %v196_v32  ;;  %v221_v38 = vunpack.c.h.bf16 %v196_v32  ;;  %v226_v42 = vunpack.c.l.bf16 %v199_v39  ;;  %v202_v56 = vld [vmem:[%s597_s14 + $0x70] sm:$0xff] }
  0x17   : > { %171 = vst.msk [vmem:[%s602_s17 + $0x78] sm:$0xff] %vm155_vm0, %v565_v3  ;;  %v254_v36 = vadd.f32 %v217_v30, %v216_v29  ;;  %v263_v41 = vadd.f32 %v223_v34, %v222_v33  ;;  %v227_v44 = vunpack.c.h.bf16 %v199_v39  ;;  %v224_v45 = vunpack.c.l.bf16 %v198_v40  ;;  %v174_v1 = vld [vmem:[%s602_s17 + $0x10] sm:$0xff]  ;;  %v172_v2 = vld [vmem:[%s602_s17] sm:$0xff]  ;;  %v173_v8 = vld [vmem:[%s602_s17 + $0x8] sm:$0xff] }
  0x18   : > { %246 = vadd.xlane.f32.xlu1 %v245_v19  ;;  %240 = vadd.xlane.f32.xlu0 %v239_v20  ;;  %v260_v43 = vadd.f32 %v221_v38, %v220_v37  ;;  %v225_v46 = vunpack.c.h.bf16 %v198_v40  ;;  %v230_v49 = vunpack.c.l.bf16 %v201_v47  ;;  %v231_v50 = vunpack.c.h.bf16 %v201_v47  ;;  %v175_v7 = vld [vmem:[%s602_s17 + $0x18] sm:$0xff]  ;;  %v176_v14 = vld [vmem:[%s602_s17 + $0x20] sm:$0xff] }
  0x19   : > { %v269_v51 = vadd.f32 %v227_v44, %v226_v42  ;;  %v228_v53 = vunpack.c.l.bf16 %v200_v48  ;;  %v229_v54 = vunpack.c.h.bf16 %v200_v48  ;;  %v234_v58 = vunpack.c.l.bf16 %v203_v55  ;;  %v177_v13 = vld [vmem:[%s602_s17 + $0x28] sm:$0xff]  ;;  %v178_v22 = vld [vmem:[%s602_s17 + $0x30] sm:$0xff] }
  0x1a   : > { %v266_v52 = vadd.f32 %v225_v46, %v224_v45  ;;  %v275_v57 = vadd.f32 %v231_v50, %v230_v49  ;;  %v235_v60 = vunpack.c.h.bf16 %v203_v55  ;;  %v232_v61 = vunpack.c.l.bf16 %v202_v56  ;;  %v179_v19 = vld [vmem:[%s602_s17 + $0x38] sm:$0xff]  ;;  %v180_v30 = vld [vmem:[%s602_s17 + $0x40] sm:$0xff] }
  0x1b   : > { %v272_v59 = vadd.f32 %v229_v54, %v228_v53  ;;  %v233_v62 = vunpack.c.h.bf16 %v202_v56  ;;  %v182_v38 = vld [vmem:[%s602_s17 + $0x50] sm:$0xff] }
  0x1c   : > { %252 = vadd.xlane.f32.xlu1 %v251_v25  ;;  %249 = vadd.xlane.f32.xlu0 %v248_v27  ;;  %v281_v63 = vadd.f32 %v235_v60, %v234_v58  ;;  %v181_v27 = vld [vmem:[%s602_s17 + $0x48] sm:$0xff]  ;;  %v184_v46 = vld [vmem:[%s602_s17 + $0x60] sm:$0xff] }
  0x1d   : > { %v278_v0 = vadd.f32 %v233_v62, %v232_v61  ;;  %v186_v58 = vld [vmem:[%s602_s17 + $0x70] sm:$0xff] }
  0x1e   : > { %v187_v54 = vld [vmem:[%s602_s17 + $0x78] sm:$0xff] }
  0x20   : > { %258 = vadd.xlane.f32.xlu1 %v257_v35  ;;  %255 = vadd.xlane.f32.xlu0 %v254_v36  ;;  %v183_v35 = vld [vmem:[%s602_s17 + $0x58] sm:$0xff] }
  0x24   : > { %264 = vadd.xlane.f32.xlu1 %v263_v41  ;;  %261 = vadd.xlane.f32.xlu0 %v260_v43  ;;  %v185_v43 = vld [vmem:[%s602_s17 + $0x68] sm:$0xff] }
  0x28   : > { %270 = vadd.xlane.f32.xlu1 %v269_v51  ;;  %267 = vadd.xlane.f32.xlu0 %v266_v52 }
  0x2c   : > { %276 = vadd.xlane.f32.xlu1 %v275_v57  ;;  %273 = vadd.xlane.f32.xlu0 %v272_v59 }
  0x30   : > { %282 = vadd.xlane.f32.xlu1 %v281_v63  ;;  %279 = vadd.xlane.f32.xlu0 %v278_v0 }
  0x9d   : > { %v244_v3 = vpop.xlane.xlu1 %243  ;;  %v238_v4 = vpop.xlane.xlu0 %237 }
  0x9e   : > { %v286_v5 = vadd.f32 %v244_v3, %v174_v1  ;;  %v284_v6 = vadd.f32 %v238_v4, %v172_v2 }
  0xa0   : > { %303 = vst.msk [vmem:[%s602_s17 + $0x10] sm:$0xff] %vm155_vm0, %v286_v5  ;;  %301 = vst.msk [vmem:[%s602_s17] sm:$0xff] %vm155_vm0, %v284_v6 }
  0xa1   : > { %v247_v9 = vpop.xlane.xlu1 %246  ;;  %v241_v10 = vpop.xlane.xlu0 %240 }
  0xa2   : > { %v287_v11 = vadd.f32 %v247_v9, %v175_v7  ;;  %v285_v12 = vadd.f32 %v241_v10, %v173_v8 }
  0xa4   : > { %304 = vst.msk [vmem:[%s602_s17 + $0x18] sm:$0xff] %vm155_vm0, %v287_v11  ;;  %302 = vst.msk [vmem:[%s602_s17 + $0x8] sm:$0xff] %vm155_vm0, %v285_v12 }
  0xa5   : > { %v253_v15 = vpop.xlane.xlu1 %252  ;;  %v250_v16 = vpop.xlane.xlu0 %249 }
  0xa6   : > { %v289_v17 = vadd.f32 %v253_v15, %v177_v13  ;;  %v288_v18 = vadd.f32 %v250_v16, %v176_v14 }
  0xa7   : > { %v322_v20 = vld [vmem:[%s602_s17 + $0x10] sm:$0xff]  ;;  %v320_v21 = vld [vmem:[%s602_s17] sm:$0xff] }
  0xa8   : > { %509 = vrsqrt.f32 %v322_v20  ;;  %306 = vst.msk [vmem:[%s602_s17 + $0x28] sm:$0xff] %vm155_vm0, %v289_v17  ;;  %305 = vst.msk [vmem:[%s602_s17 + $0x20] sm:$0xff] %vm155_vm0, %v288_v18  ;;  %vm338_vm1 = vcmp.gt.f32.partialorder %v322_v20, 0.0  ;;  %vm336_vm2 = vcmp.gt.f32.partialorder %v320_v21, 0.0 }
  0xa9   : > { %511 = vrsqrt.f32 %v320_v21  ;;  %v259_v23 = vpop.xlane.xlu1 %258  ;;  %v256_v24 = vpop.xlane.xlu0 %255 }
  0xaa   : > { %v291_v25 = vadd.f32 %v259_v23, %v179_v19  ;;  %v290_v26 = vadd.f32 %v256_v24, %v178_v22 }
  0xab   : > { %v323_v28 = vld [vmem:[%s602_s17 + $0x18] sm:$0xff]  ;;  %v321_v29 = vld [vmem:[%s602_s17 + $0x8] sm:$0xff] }
  0xac   : > { %513 = vrsqrt.f32 %v323_v28  ;;  %308 = vst.msk [vmem:[%s602_s17 + $0x38] sm:$0xff] %vm155_vm0, %v291_v25  ;;  %307 = vst.msk [vmem:[%s602_s17 + $0x30] sm:$0xff] %vm155_vm0, %v290_v26  ;;  %vm339_vm3 = vcmp.gt.f32.partialorder %v323_v28, 0.0  ;;  %vm337_vm4 = vcmp.gt.f32.partialorder %v321_v29, 0.0 }
  0xad   : > { %515 = vrsqrt.f32 %v321_v29  ;;  %v265_v31 = vpop.xlane.xlu1 %264  ;;  %v262_v32 = vpop.xlane.xlu0 %261 }
  0xae   : > { %v293_v33 = vadd.f32 %v265_v31, %v181_v27  ;;  %v292_v34 = vadd.f32 %v262_v32, %v180_v30 }
  0xaf   : > { %v325_v36 = vld [vmem:[%s602_s17 + $0x28] sm:$0xff]  ;;  %v685_v37 = vld [vmem:[%s602_s17 + $0x20] sm:$0xff] }
  0xb0   : > { %517 = vrsqrt.f32 %v325_v36  ;;  %310 = vst.msk [vmem:[%s602_s17 + $0x48] sm:$0xff] %vm155_vm0, %v293_v33  ;;  %309 = vst.msk [vmem:[%s602_s17 + $0x40] sm:$0xff] %vm155_vm0, %v292_v34  ;;  %vm341_vm5 = vcmp.gt.f32.partialorder %v325_v36, 0.0  ;;  %vm340_vm6 = vcmp.gt.f32.partialorder %v685_v37, 0.0 }
  0xb1   : > { %519 = vrsqrt.f32 %v685_v37  ;;  %v271_v39 = vpop.xlane.xlu1 %270  ;;  %v268_v40 = vpop.xlane.xlu0 %267 }
  0xb2   : > { %v295_v41 = vadd.f32 %v271_v39, %v183_v35  ;;  %v294_v42 = vadd.f32 %v268_v40, %v182_v38 }
  0xb3   : > { %v327_v44 = vld [vmem:[%s602_s17 + $0x38] sm:$0xff]  ;;  %v696_v45 = vld [vmem:[%s602_s17 + $0x30] sm:$0xff] }
  0xb4   : > { %521 = vrsqrt.f32 %v327_v44  ;;  %312 = vst.msk [vmem:[%s602_s17 + $0x58] sm:$0xff] %vm155_vm0, %v295_v41  ;;  %311 = vst.msk [vmem:[%s602_s17 + $0x50] sm:$0xff] %vm155_vm0, %v294_v42  ;;  %vm343_vm7 = vcmp.gt.f32.partialorder %v327_v44, 0.0  ;;  %vm342_vm8 = vcmp.gt.f32.partialorder %v696_v45, 0.0 }
  0xb5   : > { %v510_v47 = vpop.eup %509  ;;  %523 = vrsqrt.f32 %v696_v45  ;;  %v277_v48 = vpop.xlane.xlu1 %276 }
  0xb6   : > { %v274_v49 = vpop.xlane.xlu0 %273  ;;  %v512_v50 = vpop.eup %511  ;;  %v370_v51 = vsel %vm338_vm1, %v510_v47, 0.0  ;;  %v297_v52 = vadd.f32 %v277_v48, %v185_v43 }
  0xb7   : > { %v296_v53 = vadd.f32 %v274_v49, %v184_v46  ;;  %386 = vst.msk [vmem:[%s602_s17 + $0x10] sm:$0xff] %vm155_vm0, %v370_v51  ;;  %v368_v55 = vsel %vm336_vm2, %v512_v50, 0.0  ;;  %v329_v56 = vld [vmem:[%s602_s17 + $0x48] sm:$0xff]  ;;  %v328_v57 = vld [vmem:[%s602_s17 + $0x40] sm:$0xff] }
  0xb8   : > { %384 = vst.msk [vmem:[%s602_s17] sm:$0xff] %vm155_vm0, %v368_v55  ;;  %525 = vrsqrt.f32 %v329_v56  ;;  %314 = vst.msk [vmem:[%s602_s17 + $0x68] sm:$0xff] %vm155_vm0, %v297_v52  ;;  %vm345_vm9 = vcmp.gt.f32.partialorder %v329_v56, 0.0  ;;  %vm344_vm10 = vcmp.gt.f32.partialorder %v328_v57, 0.0 }
  0xb9   : > { %313 = vst.msk [vmem:[%s602_s17 + $0x60] sm:$0xff] %vm155_vm0, %v296_v53  ;;  %v514_v59 = vpop.eup %513  ;;  %527 = vrsqrt.f32 %v328_v57  ;;  %v283_v60 = vpop.xlane.xlu1 %282 }
  0xba   : > { %v280_v61 = vpop.xlane.xlu0 %279  ;;  %v516_v62 = vpop.eup %515  ;;  %v371_v63 = vsel %vm339_vm3, %v514_v59, 0.0  ;;  %v299_v0 = vadd.f32 %v283_v60, %v187_v54 }
  0xbb   : > { %v298_v1 = vadd.f32 %v280_v61, %v186_v58  ;;  %387 = vst.msk [vmem:[%s602_s17 + $0x18] sm:$0xff] %vm155_vm0, %v371_v63  ;;  %v369_v2 = vsel %vm337_vm4, %v516_v62, 0.0  ;;  %v331_v3 = vld [vmem:[%s602_s17 + $0x58] sm:$0xff]  ;;  %v330_v4 = vld [vmem:[%s602_s17 + $0x50] sm:$0xff] }
  0xbc   : > { %385 = vst.msk [vmem:[%s602_s17 + $0x8] sm:$0xff] %vm155_vm0, %v369_v2  ;;  %529 = vrsqrt.f32 %v331_v3  ;;  %316 = vst.msk [vmem:[%s602_s17 + $0x78] sm:$0xff] %vm155_vm0, %v299_v0  ;;  %vm347_vm11 = vcmp.gt.f32.partialorder %v331_v3, 0.0  ;;  %vm346_vm12 = vcmp.gt.f32.partialorder %v330_v4, 0.0 }
  0xbd   : > { %315 = vst.msk [vmem:[%s602_s17 + $0x70] sm:$0xff] %vm155_vm0, %v298_v1  ;;  %v518_v5 = vpop.eup %517  ;;  %531 = vrsqrt.f32 %v330_v4 }
  0xbe   : > { %v520_v6 = vpop.eup %519  ;;  %v373_v7 = vsel %vm341_vm5, %v518_v5, 0.0 }
  0xbf   : > { %389 = vst.msk [vmem:[%s602_s17 + $0x28] sm:$0xff] %vm155_vm0, %v373_v7  ;;  %v372_v8 = vsel %vm340_vm6, %v520_v6, 0.0  ;;  %v333_v9 = vld [vmem:[%s602_s17 + $0x68] sm:$0xff] }
  0xc0   : > { %v332_v10 = vld [vmem:[%s602_s17 + $0x60] sm:$0xff]  ;;  %388 = vst.msk [vmem:[%s602_s17 + $0x20] sm:$0xff] %vm155_vm0, %v372_v8  ;;  %533 = vrsqrt.f32 %v333_v9  ;;  %vm349_vm13 = vcmp.gt.f32.partialorder %v333_v9, 0.0 }
  0xc1   : > { %v522_v11 = vpop.eup %521  ;;  %535 = vrsqrt.f32 %v332_v10  ;;  %vm348_vm14 = vcmp.gt.f32.partialorder %v332_v10, 0.0 }
  0xc2   : > { %v524_v12 = vpop.eup %523  ;;  %v375_v13 = vsel %vm343_vm7, %v522_v11, 0.0 }
  0xc3   : > { %391 = vst.msk [vmem:[%s602_s17 + $0x38] sm:$0xff] %vm155_vm0, %v375_v13  ;;  %v374_v14 = vsel %vm342_vm8, %v524_v12, 0.0  ;;  %v335_v15 = vld [vmem:[%s602_s17 + $0x78] sm:$0xff] }
  0xc4   : > { %v334_v16 = vld [vmem:[%s602_s17 + $0x70] sm:$0xff]  ;;  %390 = vst.msk [vmem:[%s602_s17 + $0x30] sm:$0xff] %vm155_vm0, %v374_v14  ;;  %537 = vrsqrt.f32 %v335_v15  ;;  %vm351_vm15 = vcmp.gt.f32.partialorder %v335_v15, 0.0 }
  0xc5   : > { %v526_v17 = vpop.eup %525  ;;  %539 = vrsqrt.f32 %v334_v16  ;;  %vm350_vm1 = vcmp.gt.f32.partialorder %v334_v16, 0.0 }
  0xc6   : > { %v528_v18 = vpop.eup %527  ;;  %v377_v19 = vsel %vm345_vm9, %v526_v17, 0.0 }
  0xc7   : > { %393 = vst.msk [vmem:[%s602_s17 + $0x48] sm:$0xff] %vm155_vm0, %v377_v19  ;;  %v376_v20 = vsel %vm344_vm10, %v528_v18, 0.0 }
  0xc8   : > { %392 = vst.msk [vmem:[%s602_s17 + $0x40] sm:$0xff] %vm155_vm0, %v376_v20 }
  0xc9   : > { %v530_v21 = vpop.eup %529 }
  0xca   : > { %v532_v22 = vpop.eup %531  ;;  %v379_v23 = vsel %vm347_vm11, %v530_v21, 0.0 }
  0xcb   : > { %395 = vst.msk [vmem:[%s602_s17 + $0x58] sm:$0xff] %vm155_vm0, %v379_v23  ;;  %v378_v24 = vsel %vm346_vm12, %v532_v22, 0.0 }
  0xcc   : > { %394 = vst.msk [vmem:[%s602_s17 + $0x50] sm:$0xff] %vm155_vm0, %v378_v24 }
  0xcd   : > { %v534_v25 = vpop.eup %533 }
  0xce   : > { %v536_v26 = vpop.eup %535  ;;  %v381_v27 = vsel %vm349_vm13, %v534_v25, 0.0 }
  0xcf   : > { %397 = vst.msk [vmem:[%s602_s17 + $0x68] sm:$0xff] %vm155_vm0, %v381_v27  ;;  %v380_v28 = vsel %vm348_vm14, %v536_v26, 0.0 }
  0xd0   : > { %396 = vst.msk [vmem:[%s602_s17 + $0x60] sm:$0xff] %vm155_vm0, %v380_v28 }
  0xd1   : > { %v538_v29 = vpop.eup %537 }
  0xd2   : > { %v540_v30 = vpop.eup %539  ;;  %v383_v31 = vsel %vm351_vm15, %v538_v29, 0.0 }
  0xd3   : > { %399 = vst.msk [vmem:[%s602_s17 + $0x78] sm:$0xff] %vm155_vm0, %v383_v31  ;;  %v382_v32 = vsel %vm350_vm1, %v540_v30, 0.0 }
  0xd4   : > { %398 = vst.msk [vmem:[%s602_s17 + $0x70] sm:$0xff] %vm155_vm0, %v382_v32 }
  0xd5 PF: > { %s11_s8 = sadd.s32 1, %s563_s8   ;;  %s767_s6 = smov %s559_s7 }
  0xd6   : > { %p8_p5 = scmp.ge.s32.totalorder %s11_s8, 4   ;;  %s768_s7 = smov %s770_s9 }
  0xd8   :  { %10 = sbr.rel (!%p8_p5) target bundleno = 2 (0x2), region = 62 }

// kernel: gnn_layer.3
= control target key start
LH: loop header
LB: loop body
LE: loop exit
PB: predicated region body
PF: predicated region fallthrough
CT: control target
= control target key end

     0   :  { %s1413_s18 = smov 0   ;;  %s1415_s19 = smov 0   ;;  %s1583_s0 = inlined_call_operand.vmem [shape: f32[256,1], index: 0, kind: input, shape index: {}]   ;;  %s1584_s1 = inlined_call_operand.vmem [shape: bf16[256,128], index: 1, kind: input, shape index: {}]   ;;  %s1585_s2 = inlined_call_operand.vmem [shape: bf16[256,256], index: 2, kind: input, shape index: {}]   ;;  %s1586_s3 = inlined_call_operand.vmem [shape: bf16[128,128], index: 3, kind: input, shape index: {}]   ;;  %s1587_s4 = inlined_call_operand.vmem [shape: f32[1,128], index: 4, kind: input, shape index: {}]   ;;  %s1588_s5 = inlined_call_operand.vmem [shape: f32[256,128], index: 5, kind: output, shape index: {}]  }
   0x1   :  { %s1417_s20 = smov 0  }
   0x2 LB: > { %s27_s21 = sadd.s32 1, %s1376_s19  ;;  %p1119_p0 = scmp.ge.s32.totalorder %s1380_s20, 1  ;;  %s1380_s20 = sphi %s1417_s20, %s15_s20   ;;  %s1376_s19 = sphi %s1415_s19, %s1590_s19   ;;  %s1372_s18 = sphi %s1413_s18, %s1589_s18  }
   0x3   : > { %p29_p1 = scmp.ge.s32.totalorder %s27_s21, 2  ;;  %p230_p2 = scmp.lt.s32.totalorder %s1380_s20, 3 }
   0x5   : > { %s1592_s21 = smov (%p29_p1, %s27_s21), 0  ;;  %p231_p3 = pnand %p1119_p0, %p230_p2 }
   0x6   : > { %s1120_s24 = sshll.u32 (!%p231_p3), %s1372_s18, 4 }
   0x7   : > { %234 = sbr.rel (%p231_p3) target bundleno = 508 (0x1fc), region = 40  ;;  %p274_p4 = scmp.lt.s32.totalorder (!%p231_p3), %s1120_s24, 31 }
   0xc   : > { %v1310_v0 = vld [vmem:[%s1584_s1 + $0x78] sm:$0xff]   ;;  %v1312_v2 = vld [vmem:[%s1584_s1 + $0x70] sm:$0xff]   ;;  %v1382_v4 = vmov 0   ;;  %v1314_v5 = vld [vmem:[%s1584_s1 + $0x68] sm:$0xff]   ;;  %s1594_s24 = smov (!%p274_p4, %s1120_s24), 31 }
   0xd   : > { %v1311_v1 = vld [vmem:[%s1584_s1 + $0x38] sm:$0xff]   ;;  %1171 = vmatprep.subr.bf16.mxu0 %v1310_v0  ;;  %v1313_v3 = vld [vmem:[%s1584_s1 + $0x30] sm:$0xff]   ;;  %1308 = vset.pattern.permute.xlu0 %v1382_v4  ;;  %v1315_v6 = vld [vmem:[%s1584_s1 + $0x28] sm:$0xff]   ;;  %s1455_s14 = sshll.u32 %s1594_s24, 3 }
   0xe   : > { %1172 = vmatpush3.bf16.msra.mxu0 %v1311_v1  ;;  %1309 = vset.pattern.permute.xlu1 %v1382_v4  ;;  %v1316_v7 = vld [vmem:[%s1584_s1 + $0x60] sm:$0xff]   ;;  %v1318_v9 = vld [vmem:[%s1584_s1 + $0x58] sm:$0xff]   ;;  %s1464_s22 = scalar_lea.vmem %s1585_s2, %s1455_s14  ;;  %v1320_v11 = vld [vmem:[%s1584_s1 + $0x50] sm:$0xff]   ;;  %s1486_s10 = scalar_lea.vmem %s1583_s0, %s1455_s14 }
   0xf   : > { %1173 = vmatprep.subr.bf16.mxu0 %v1312_v2  ;;  %v1317_v8 = vld [vmem:[%s1584_s1 + $0x20] sm:$0xff]   ;;  %v1319_v10 = vld [vmem:[%s1584_s1 + $0x18] sm:$0xff]   ;;  %v1321_v13 = vld [vmem:[%s1584_s1 + $0x10] sm:$0xff]   ;;  %s1556_s15 = scalar_lea.vmem %s1588_s5, %s1455_s14 }
  0x10   : > { %v1328_v12 = vld [vmem:[%s1464_s22 + $0x4] ss:$8 sps:$4 sm:$0xff]   ;;  %v698_v19 = vld [vmem:[%s1486_s10 + $0x10] sm:$0xff]  ;;  %v699_v21 = vld [vmem:[%s1486_s10 + $0x18] sm:$0xff] }
  0x11   : > { %596 = vmatprep.mubr.bf16.mxu0 %v1328_v12  ;;  %v1322_v14 = vld [vmem:[%s1584_s1 + $0x48] sm:$0xff]   ;;  %v1324_v16 = vld [vmem:[%s1584_s1 + $0x40] sm:$0xff]   ;;  %740 = vperm.xlu1 %1309, %v698_v19   ;;  %v1329_v23 = vld [vmem:[%s1464_s22 + $0x14] ss:$8 sps:$4 sm:$0xff]  }
  0x12   : > { %1174 = vmatpush3.bf16.msra.mxu0 %v1313_v3  ;;  %v1323_v15 = vld [vmem:[%s1584_s1 + $0x8] sm:$0xff]   ;;  %v696_v17 = vld [vmem:[%s1486_s10] sm:$0xff]  ;;  %v1350_v26 = vld [vmem:[%s1586_s3 + $0x38] sm:$0xff]  }
  0x13   : > { %1175 = vmatprep.subr.bf16.mxu0 %v1314_v5  ;;  %v1325_v18 = vld [vmem:[%s1584_s1] sm:$0xff]   ;;  %730 = vperm.xlu0 %1308, %v696_v17   ;;  %v697_v20 = vld [vmem:[%s1486_s10 + $0x8] sm:$0xff]  ;;  %v1351_v27 = vld [vmem:[%s1586_s3 + $0x30] sm:$0xff]  }
  0x14   : > { %v1326_v22 = vld [vmem:[%s1464_s22] ss:$8 sps:$4 sm:$0xff]   ;;  %v702_v28 = vld [vmem:[%s1486_s10 + $0x30] sm:$0xff]  ;;  %1251 = vmatprep.subr.bf16.mxu1 %v1350_v26  ;;  %v703_v29 = vld [vmem:[%s1486_s10 + $0x38] sm:$0xff] }
  0x15   : > { %v700_v24 = vld [vmem:[%s1486_s10 + $0x20] sm:$0xff]  ;;  %v701_v25 = vld [vmem:[%s1486_s10 + $0x28] sm:$0xff]  ;;  %745 = vperm.xlu1 %1309, %v699_v21   ;;  %1252 = vmatpush3.bf16.msra.mxu1 %v1350_v26  ;;  %v1331_v31 = vld [vmem:[%s1464_s22 + $0x10] ss:$8 sps:$4 sm:$0xff]  }
  0x16   : > { %1176 = vmatpush3.bf16.msra.mxu0 %v1315_v6  ;;  %v1352_v30 = vld [vmem:[%s1586_s3 + $0x28] sm:$0xff]   ;;  %1253 = vmatprep.subr.bf16.mxu1 %v1351_v27  ;;  %v704_v33 = vld [vmem:[%s1486_s10 + $0x40] sm:$0xff]  ;;  %v706_v35 = vld [vmem:[%s1486_s10 + $0x50] sm:$0xff] }
  0x17   : > { %1177 = vmatprep.subr.bf16.mxu0 %v1316_v7  ;;  %735 = vperm.xlu0 %1308, %v697_v20   ;;  %v1332_v32 = vld [vmem:[%s1464_s22 + $0x24] ss:$8 sps:$4 sm:$0xff]   ;;  %v707_v36 = vld [vmem:[%s1486_s10 + $0x58] sm:$0xff]  ;;  %v1334_v37 = vld [vmem:[%s1464_s22 + $0x20] ss:$8 sps:$4 sm:$0xff]  }
  0x18   : > { %v705_v34 = vld [vmem:[%s1486_s10 + $0x48] sm:$0xff]  ;;  %v1335_v38 = vld [vmem:[%s1464_s22 + $0x34] ss:$8 sps:$4 sm:$0xff]   ;;  %v708_v39 = vld [vmem:[%s1486_s10 + $0x60] sm:$0xff] }
  0x19   : > { %755 = vperm.xlu1 %1309, %v701_v25   ;;  %1254 = vmatpush3.bf16.msra.mxu1 %v1351_v27  ;;  %v709_v40 = vld [vmem:[%s1486_s10 + $0x68] sm:$0xff]  ;;  %v710_v41 = vld [vmem:[%s1486_s10 + $0x70] sm:$0xff]  ;;  %v711_v42 = vld [vmem:[%s1486_s10 + $0x78] sm:$0xff] }
  0x1a   : > { %1178 = vmatpush3.bf16.msra.mxu0 %v1317_v8  ;;  %1255 = vmatprep.subr.bf16.mxu1 %v1352_v30  ;;  %v1337_v43 = vld [vmem:[%s1464_s22 + $0x30] ss:$8 sps:$4 sm:$0xff]   ;;  %v1338_v44 = vld [vmem:[%s1464_s22 + $0x44] ss:$8 sps:$4 sm:$0xff]   ;;  %v1340_v45 = vld [vmem:[%s1464_s22 + $0x40] ss:$8 sps:$4 sm:$0xff]  }
  0x1b   : > { %1179 = vmatprep.subr.bf16.mxu0 %v1318_v9  ;;  %750 = vperm.xlu0 %1308, %v700_v24   ;;  %v1341_v46 = vld [vmem:[%s1464_s22 + $0x54] ss:$8 sps:$4 sm:$0xff]   ;;  %v1343_v47 = vld [vmem:[%s1464_s22 + $0x50] ss:$8 sps:$4 sm:$0xff]   ;;  %v1344_v48 = vld [vmem:[%s1464_s22 + $0x64] ss:$8 sps:$4 sm:$0xff]  }
  0x1c   : > { %v1346_v49 = vld [vmem:[%s1464_s22 + $0x60] ss:$8 sps:$4 sm:$0xff]   ;;  %v1347_v50 = vld [vmem:[%s1464_s22 + $0x74] ss:$8 sps:$4 sm:$0xff]   ;;  %v1349_v51 = vld [vmem:[%s1464_s22 + $0x70] ss:$8 sps:$4 sm:$0xff]  }
  0x1d   : > { %765 = vperm.xlu1 %1309, %v703_v29   ;;  %1256 = vmatpush3.bf16.msra.mxu1 %v1352_v30  ;;  %v1353_v52 = vld [vmem:[%s1586_s3 + $0x20] sm:$0xff]   ;;  %v1354_v53 = vld [vmem:[%s1586_s3 + $0x18] sm:$0xff]   ;;  %v1355_v54 = vld [vmem:[%s1586_s3 + $0x10] sm:$0xff]  }
  0x1e   : > { %1180 = vmatpush3.bf16.msra.mxu0 %v1319_v10  ;;  %1257 = vmatprep.subr.bf16.mxu1 %v1353_v52  ;;  %v1356_v55 = vld [vmem:[%s1586_s3 + $0x8] sm:$0xff]   ;;  %v1357_v56 = vld [vmem:[%s1586_s3] sm:$0xff]  }
  0x1f   : > { %1181 = vmatprep.subr.bf16.mxu0 %v1320_v11  ;;  %760 = vperm.xlu0 %1308, %v702_v28  }
  0x21   : > { %775 = vperm.xlu1 %1309, %v705_v34   ;;  %1258 = vmatpush3.bf16.msra.mxu1 %v1353_v52 }
  0x22   : > { %1182 = vmatpush3.bf16.msra.mxu0 %v1321_v13  ;;  %1259 = vmatprep.subr.bf16.mxu1 %v1354_v53 }
  0x23   : > { %1183 = vmatprep.subr.bf16.mxu0 %v1322_v14  ;;  %770 = vperm.xlu0 %1308, %v704_v33  }
  0x25   : > { %785 = vperm.xlu1 %1309, %v707_v36   ;;  %1260 = vmatpush3.bf16.msra.mxu1 %v1354_v53 }
  0x26   : > { %1184 = vmatpush3.bf16.msra.mxu0 %v1323_v15  ;;  %1261 = vmatprep.subr.bf16.mxu1 %v1355_v54 }
  0x27   : > { %1185 = vmatprep.subr.bf16.mxu0 %v1324_v16  ;;  %780 = vperm.xlu0 %1308, %v706_v35  }
  0x29   : > { %795 = vperm.xlu1 %1309, %v709_v40   ;;  %1262 = vmatpush3.bf16.msra.mxu1 %v1355_v54 }
  0x2a   : > { %1186 = vmatpush3.bf16.msra.mxu0 %v1325_v18  ;;  %1263 = vmatprep.subr.bf16.mxu1 %v1356_v55 }
  0x2b   : > { %790 = vperm.xlu0 %1308, %v708_v39  }
  0x2d   : > { %597 = vmatmul.mubr.bf16.vlgmr.msra.gmra.mxu0 %v1326_v22  ;;  %805 = vperm.xlu1 %1309, %v711_v42  }
  0x2e   : > { %604 = vmatprep.mubr.bf16.mxu0 %v1329_v23  ;;  %1264 = vmatpush3.bf16.msra.mxu1 %v1356_v55 }
  0x2f   : > { %800 = vperm.xlu0 %1308, %v710_v41   ;;  %1265 = vmatprep.subr.bf16.mxu1 %v1357_v56 }
  0x32   : > { %1266 = vmatpush3.bf16.msra.mxu1 %v1357_v56 }
  0x35   : > { %605 = vmatmul.mubr.bf16.gmra.mxu0 %v1331_v31 }
  0x36   : > { %612 = vmatprep.mubr.bf16.mxu0 %v1332_v32 }
  0x3d   : > { %613 = vmatmul.mubr.bf16.gmra.mxu0 %v1334_v37 }
  0x3e   : > { %620 = vmatprep.mubr.bf16.mxu0 %v1335_v38 }
  0x45   : > { %621 = vmatmul.mubr.bf16.gmra.mxu0 %v1337_v43 }
  0x46   : > { %628 = vmatprep.mubr.bf16.mxu0 %v1338_v44 }
  0x4d   : > { %629 = vmatmul.mubr.bf16.gmra.mxu0 %v1340_v45 }
  0x4e   : > { %636 = vmatprep.mubr.bf16.mxu0 %v1341_v46 }
  0x55   : > { %637 = vmatmul.mubr.bf16.gmra.mxu0 %v1343_v47 }
  0x56   : > { %644 = vmatprep.mubr.bf16.mxu0 %v1344_v48 }
  0x5d   : > { %645 = vmatmul.mubr.bf16.gmra.mxu0 %v1346_v49 }
  0x5e   : > { %652 = vmatprep.mubr.bf16.mxu0 %v1347_v50 }
  0x65   : > { %653 = vmatmul.mubr.bf16.gmra.mxu0 %v1349_v51 }
  0x8c   : > { %v741_v4 = vpop.permute.xlu1 %740 }
  0x8e   : > { %v731_v58 = vpop.permute.xlu0 %730 }
  0x90   : > { %v746_v11 = vpop.permute.xlu1 %745 }
  0x92   : > { %v736_v63 = vpop.permute.xlu0 %735 }
  0x94   : > { %v756_v22 = vpop.permute.xlu1 %755 }
  0x96   : > { %v751_v20 = vpop.permute.xlu0 %750 }
  0x98   : > { %v766_v33 = vpop.permute.xlu1 %765 }
  0x9a   : > { %v761_v31 = vpop.permute.xlu0 %760 }
  0x9c   : > { %v776_v44 = vpop.permute.xlu1 %775 }
  0x9e   : > { %v771_v42 = vpop.permute.xlu0 %770 }
  0xa0   : > { %v786_v55 = vpop.permute.xlu1 %785 }
  0xa2   : > { %v781_v53 = vpop.permute.xlu0 %780 }
  0xed   : > { %v1187_v57 = vpop.f32.mrf.mxu0 }
  0xef   : > { %v1188_v59 = vpop.f32.mrf.mxu0 }
  0xf0   : > { %v1189_v61 = vadd.f32 %v1188_v59, %v1187_v57 }
  0xf1   : > { %v1190_v60 = vpop.f32.mrf.mxu0 }
  0xf2   : > { %v808_v2 = vmul.f32 %v1189_v61, %v731_v58 }
  0xf3   : > { %v1191_v62 = vpop.f32.mrf.mxu0 }
  0xf4   : > { %v1192_v0 = vadd.f32 %v1191_v62, %v1190_v60 }
  0xf5   : > { %v1193_v1 = vpop.f32.mrf.mxu0 }
  0xf6   : > { %v809_v3 = vmul.f32 %v1192_v0, %v736_v63  ;;  %v791_v0 = vpop.permute.xlu0 %790 }
  0xf7   : > { %v1194_v5 = vpop.f32.mrf.mxu0 }
  0xf8   : > { %v824_v6 = vpack.c.bf16 %v809_v3, %v808_v2  ;;  %v1195_v8 = vadd.f32 %v1194_v5, %v1193_v1  ;;  %v796_v2 = vpop.permute.xlu1 %795 }
  0xf9   : > { %v1196_v7 = vpop.f32.mrf.mxu0 }
  0xfa   : > { %1267 = vmatprep.mubr.bf16.mxu1 %v824_v6  ;;  %v810_v13 = vmul.f32 %v1195_v8, %v741_v4 }
  0xfb   : > { %v1197_v9 = vpop.f32.mrf.mxu0 }
  0xfc   : > { %v1198_v10 = vadd.f32 %v1197_v9, %v1196_v7 }
  0xfd   : > { %v1199_v12 = vpop.f32.mrf.mxu0 }
  0xfe   : > { %v811_v14 = vmul.f32 %v1198_v10, %v746_v11 }
  0xff   : > { %v1200_v15 = vpop.f32.mrf.mxu0 }
 0x100   : > { %v825_v16 = vpack.c.bf16 %v811_v14, %v810_v13  ;;  %v1201_v18 = vadd.f32 %v1200_v15, %v1199_v12  ;;  %v801_v12 = vpop.permute.xlu0 %800  ;;  %v806_v13 = vpop.permute.xlu1 %805 }
 0x101   : > { %v1202_v17 = vpop.f32.mrf.mxu0 }
 0x102   : > { %1268 = vmatmul.mubr.bf16.vlgmr.msra.gmra.mxu1 %v825_v16  ;;  %v812_v24 = vmul.f32 %v1201_v18, %v751_v20 }
 0x103   : > { %v1203_v19 = vpop.f32.mrf.mxu0 }
 0x104   : > { %v1204_v21 = vadd.f32 %v1203_v19, %v1202_v17  ;;  %v1159_v17 = vld [vmem:[%s1587_s4] ss:$0 sm:$0xff] }
 0x105   : > { %v1205_v23 = vpop.f32.mrf.mxu0 }
 0x106   : > { %v813_v25 = vmul.f32 %v1204_v21, %v756_v22 }
 0x107   : > { %v1206_v26 = vpop.f32.mrf.mxu0 }
 0x108   : > { %v826_v27 = vpack.c.bf16 %v813_v25, %v812_v24  ;;  %v1207_v29 = vadd.f32 %v1206_v26, %v1205_v23 }
 0x109   : > { %v1208_v28 = vpop.f32.mrf.mxu0 }
 0x10a   : > { %1271 = vmatprep.mubr.bf16.mxu1 %v826_v27  ;;  %v814_v35 = vmul.f32 %v1207_v29, %v761_v31 }
 0x10b   : > { %v1209_v30 = vpop.f32.mrf.mxu0 }
 0x10c   : > { %v1210_v32 = vadd.f32 %v1209_v30, %v1208_v28 }
 0x10d   : > { %v1211_v34 = vpop.f32.mrf.mxu0 }
 0x10e   : > { %v815_v36 = vmul.f32 %v1210_v32, %v766_v33 }
 0x10f   : > { %v1212_v37 = vpop.f32.mrf.mxu0 }
 0x110   : > { %v827_v38 = vpack.c.bf16 %v815_v36, %v814_v35  ;;  %v1213_v40 = vadd.f32 %v1212_v37, %v1211_v34 }
 0x111   : > { %v1214_v39 = vpop.f32.mrf.mxu0 }
 0x112   : > { %1272 = vmatmul.mubr.bf16.gmra.mxu1 %v827_v38  ;;  %v816_v46 = vmul.f32 %v1213_v40, %v771_v42 }
 0x113   : > { %v1215_v41 = vpop.f32.mrf.mxu0 }
 0x114   : > { %v1216_v43 = vadd.f32 %v1215_v41, %v1214_v39 }
 0x115   : > { %v1217_v45 = vpop.f32.mrf.mxu0 }
 0x116   : > { %v817_v47 = vmul.f32 %v1216_v43, %v776_v44 }
 0x117   : > { %v1218_v48 = vpop.f32.mrf.mxu0 }
 0x118   : > { %v828_v49 = vpack.c.bf16 %v817_v47, %v816_v46  ;;  %v1219_v51 = vadd.f32 %v1218_v48, %v1217_v45 }
 0x119   : > { %v1220_v50 = vpop.f32.mrf.mxu0 }
 0x11a   : > { %1275 = vmatprep.mubr.bf16.mxu1 %v828_v49  ;;  %v818_v57 = vmul.f32 %v1219_v51, %v781_v53 }
 0x11b   : > { %v1221_v52 = vpop.f32.mrf.mxu0 }
 0x11c   : > { %v1222_v54 = vadd.f32 %v1221_v52, %v1220_v50 }
 0x11d   : > { %v1223_v56 = vpop.f32.mrf.mxu0 }
 0x11e   : > { %v819_v58 = vmul.f32 %v1222_v54, %v786_v55 }
 0x11f   : > { %v1224_v59 = vpop.f32.mrf.mxu0 }
 0x120   : > { %v829_v60 = vpack.c.bf16 %v819_v58, %v818_v57  ;;  %v1225_v62 = vadd.f32 %v1224_v59, %v1223_v56 }
 0x121   : > { %v1226_v61 = vpop.f32.mrf.mxu0 }
 0x122   : > { %1276 = vmatmul.mubr.bf16.gmra.mxu1 %v829_v60  ;;  %v820_v4 = vmul.f32 %v1225_v62, %v791_v0 }
 0x123   : > { %v1227_v63 = vpop.f32.mrf.mxu0 }
 0x124   : > { %v1228_v1 = vadd.f32 %v1227_v63, %v1226_v61 }
 0x125   : > { %v1229_v3 = vpop.f32.mrf.mxu0 }
 0x126   : > { %v821_v5 = vmul.f32 %v1228_v1, %v796_v2 }
 0x127   : > { %v1230_v6 = vpop.f32.mrf.mxu0 }
 0x128   : > { %v830_v7 = vpack.c.bf16 %v821_v5, %v820_v4  ;;  %v1231_v9 = vadd.f32 %v1230_v6, %v1229_v3 }
 0x129   : > { %v1232_v8 = vpop.f32.mrf.mxu0 }
 0x12a   : > { %1279 = vmatprep.mubr.bf16.mxu1 %v830_v7  ;;  %v822_v14 = vmul.f32 %v1231_v9, %v801_v12 }
 0x12b   : > { %v1233_v10 = vpop.f32.mrf.mxu0 }
 0x12c   : > { %v1234_v11 = vadd.f32 %v1233_v10, %v1232_v8 }
 0x12e   : > { %v823_v15 = vmul.f32 %v1234_v11, %v806_v13 }
 0x130   : > { %v831_v16 = vpack.c.bf16 %v823_v15, %v822_v14 }
 0x132   : > { %1280 = vmatmul.mubr.bf16.gmra.mxu1 %v831_v16 }
 0x1c2   : > { %v1269_v18 = vpop.f32.mrf.mxu1 }
 0x1c3   : > { %v946_v19 = vadd.f32 %v1269_v18, %v1159_v17 }
 0x1c4   : > { %v937_v20 = vpop.f32.mrf.mxu1 }
 0x1c5   : > { %1002 = vst [vmem:[%s1556_s15 + $0x10] sm:$0xff] %v946_v19  ;;  %v938_v21 = vadd.f32 %v1159_v17, %v937_v20 }
 0x1c6   : > { %v1270_v22 = vpop.f32.mrf.mxu1 }
 0x1c7   : > { %1000 = vst [vmem:[%s1556_s15] sm:$0xff] %v938_v21  ;;  %v949_v23 = vadd.f32 %v1270_v22, %v1159_v17 }
 0x1c8   : > { %v940_v24 = vpop.f32.mrf.mxu1 }
 0x1c9   : > { %1003 = vst [vmem:[%s1556_s15 + $0x18] sm:$0xff] %v949_v23  ;;  %v941_v25 = vadd.f32 %v1159_v17, %v940_v24 }
 0x1cb   : > { %1001 = vst [vmem:[%s1556_s15 + $0x8] sm:$0xff] %v941_v25 }
 0x1d2   : > { %v1273_v26 = vpop.f32.mrf.mxu1 }
 0x1d3   : > { %v962_v27 = vadd.f32 %v1273_v26, %v1159_v17 }
 0x1d4   : > { %v953_v28 = vpop.f32.mrf.mxu1 }
 0x1d5   : > { %1006 = vst [vmem:[%s1556_s15 + $0x30] sm:$0xff] %v962_v27  ;;  %v954_v29 = vadd.f32 %v1159_v17, %v953_v28 }
 0x1d6   : > { %v1274_v30 = vpop.f32.mrf.mxu1 }
 0x1d7   : > { %1004 = vst [vmem:[%s1556_s15 + $0x20] sm:$0xff] %v954_v29  ;;  %v965_v31 = vadd.f32 %v1274_v30, %v1159_v17 }
 0x1d8   : > { %v956_v32 = vpop.f32.mrf.mxu1 }
 0x1d9   : > { %1007 = vst [vmem:[%s1556_s15 + $0x38] sm:$0xff] %v965_v31  ;;  %v957_v33 = vadd.f32 %v1159_v17, %v956_v32 }
 0x1db   : > { %1005 = vst [vmem:[%s1556_s15 + $0x28] sm:$0xff] %v957_v33 }
 0x1e2   : > { %v1277_v34 = vpop.f32.mrf.mxu1 }
 0x1e3   : > { %v978_v35 = vadd.f32 %v1277_v34, %v1159_v17 }
 0x1e4   : > { %v969_v36 = vpop.f32.mrf.mxu1 }
 0x1e5   : > { %1010 = vst [vmem:[%s1556_s15 + $0x50] sm:$0xff] %v978_v35  ;;  %v970_v37 = vadd.f32 %v1159_v17, %v969_v36 }
 0x1e6   : > { %v1278_v38 = vpop.f32.mrf.mxu1 }
 0x1e7   : > { %1008 = vst [vmem:[%s1556_s15 + $0x40] sm:$0xff] %v970_v37  ;;  %v981_v39 = vadd.f32 %v1278_v38, %v1159_v17 }
 0x1e8   : > { %v972_v40 = vpop.f32.mrf.mxu1 }
 0x1e9   : > { %1011 = vst [vmem:[%s1556_s15 + $0x58] sm:$0xff] %v981_v39  ;;  %v973_v41 = vadd.f32 %v1159_v17, %v972_v40 }
 0x1eb   : > { %1009 = vst [vmem:[%s1556_s15 + $0x48] sm:$0xff] %v973_v41 }
 0x1f2   : > { %v1281_v42 = vpop.f32.mrf.mxu1 }
 0x1f3   : > { %v994_v43 = vadd.f32 %v1281_v42, %v1159_v17 }
 0x1f4   : > { %v985_v44 = vpop.f32.mrf.mxu1 }
 0x1f5   : > { %1014 = vst [vmem:[%s1556_s15 + $0x70] sm:$0xff] %v994_v43  ;;  %v986_v45 = vadd.f32 %v1159_v17, %v985_v44 }
 0x1f6   : > { %v1282_v46 = vpop.f32.mrf.mxu1 }
 0x1f7   : > { %1012 = vst [vmem:[%s1556_s15 + $0x60] sm:$0xff] %v986_v45  ;;  %v997_v47 = vadd.f32 %v1282_v46, %v1159_v17 }
 0x1f8   : > { %v988_v48 = vpop.f32.mrf.mxu1 }
 0x1f9   : > { %1015 = vst [vmem:[%s1556_s15 + $0x78] sm:$0xff] %v997_v47  ;;  %v989_v49 = vadd.f32 %v1159_v17, %v988_v48 }
 0x1fb   : > { %1013 = vst [vmem:[%s1556_s15 + $0x68] sm:$0xff] %v989_v49 }
 0x1fc PF: > { %s15_s20 = sadd.s32 1, %s1380_s20   ;;  %s1589_s18 = smov %s1376_s19 }
 0x1fd   : > { %p12_p5 = scmp.ge.s32.totalorder %s15_s20, 4   ;;  %s1590_s19 = smov %s1592_s21 }
 0x1ff   :  { %14 = sbr.rel (!%p12_p5) target bundleno = 2 (0x2), region = 84 }

</bundles_post_ra>
